<compile_context>
chip_gen: v5e
topology: v5e:2x2
jax: 0.10.0
libtpu: 0.0.40
codegen_flags: <defaults>
</compile_context>

<pallas_src>
import numpy as np
import jax
import jax.numpy as jnp
from jax.experimental import pallas as pl
from jax.experimental.pallas import tpu as pltpu


def _round_up(x, m):
    return ((x + m - 1) // m) * m


def fw_kernel(x_ref, w1_ref, b1_ref, w2_ref, b2_ref, o_ref):
    # x : (TN, fin)      streamed tile of flattened rows (native dtype)
    # w1: (fin, fmid_p)  b1: (1, fmid_p)   (fmid_p = fmid padded to 128 lanes)
    # w2: (fmid_p, fout) b2: (1, fout)     biases kept in f32
    # o : (TN, fout)
    h = jnp.dot(x_ref[...], w1_ref[...], preferred_element_type=jnp.float32)
    h = jnp.maximum(h + b1_ref[...], 0.0)                       # bias + ReLU in f32
    y = jnp.dot(h.astype(w2_ref.dtype), w2_ref[...],
                preferred_element_type=jnp.float32) + b2_ref[...]
    o_ref[...] = y.astype(o_ref.dtype)


def fw_forward(x, params, *, out_dtype=None, max_tile_rows=8192,
               vmem_row_budget=24 << 20):
    """Fw.forward: y = relu(x @ W1 + b1) @ W2 + b2, applied over the last dim.

    x: (..., fin) in f32 or bf16.  Weights are expected pre-transposed to
    (in, out), i.e. W1 = torch_linear1.weight.T etc.  Returns (..., fout) in
    `out_dtype` (defaults to x.dtype).  MXU accumulation is always f32.
    """
    w1, b1, w2, b2 = params["w1"], params["b1"], params["w2"], params["b2"]
    fin, fmid = w1.shape
    fout = w2.shape[1]
    assert x.shape[-1] == fin, (x.shape, fin)

    lead = x.shape[:-1]
    n = int(np.prod(lead)) if lead else 1
    x2 = x.reshape(n, fin)                         # metadata-only, no HBM copy
    in_dt = x2.dtype
    out_dt = out_dtype if out_dtype is not None else in_dt

    # Weight prep (tiny, few-KiB one-off ops): cast to the streaming dtype and
    # zero-pad the hidden dim to a lane-dense multiple of 128.
    fmid_p = _round_up(fmid, 128)
    w1p = jnp.zeros((fin, fmid_p), in_dt).at[:, :fmid].set(w1.astype(in_dt))
    b1p = jnp.zeros((1, fmid_p), jnp.float32).at[:, :fmid].set(
        b1.reshape(1, fmid).astype(jnp.float32))
    w2p = jnp.zeros((fmid_p, fout), in_dt).at[:fmid, :].set(w2.astype(in_dt))
    b2p = b2.reshape(1, fout).astype(jnp.float32)

    # Row-tile sizing: biggest tile that fits a conservative VMEM budget.
    # Double-buffered x / out tiles are lane-padded to 128 in VMEM; the f32
    # hidden activation lives in VMEM scratch.
    lane = 128
    in_isz = np.dtype(in_dt).itemsize
    out_isz = np.dtype(out_dt).itemsize
    sub = max(8, 32 // in_isz, 32 // out_isz)      # sublane granule (dtype packing)
    per_row = (2 * _round_up(fin, lane) * in_isz   # x, double buffered
               + 2 * _round_up(fout, lane) * out_isz  # y, double buffered
               + 2 * fmid_p * 4)                   # f32 hidden (+ temp)
    tn = max(sub, (vmem_row_budget // per_row) // sub * sub)
    tn = min(tn, max_tile_rows, _round_up(n, sub))

    steps = pl.cdiv(n, tn)
    # Give the "parallel" grid axis >= 2 steps when there is enough work so it
    # can shard across the two TensorCores on v7x.
    if steps == 1 and n > 2048:
        tn = _round_up(pl.cdiv(n, 2), sub)
        steps = pl.cdiv(n, tn)

    weight_bytes = ((w1p.size + w2p.size) * in_isz
                    + (b1p.size + b2p.size) * 4)
    est_vmem = per_row * tn + 2 * weight_bytes
    vmem_limit = int(min(48 << 20, max(24 << 20, 2 * est_vmem)))

    cost = pl.CostEstimate(
        flops=2 * n * (fin * fmid_p + fmid_p * fout),
        transcendentals=0,
        bytes_accessed=n * fin * in_isz + n * fout * out_isz + weight_bytes,
    )

    out = pl.pallas_call(
        fw_kernel,
        out_shape=jax.ShapeDtypeStruct((n, fout), out_dt),
        grid=(steps,),
        in_specs=[
            pl.BlockSpec((tn, fin), lambda i: (i, 0)),       # streamed row tile
            pl.BlockSpec((fin, fmid_p), lambda i: (0, 0)),   # resident weights
            pl.BlockSpec((1, fmid_p), lambda i: (0, 0)),
            pl.BlockSpec((fmid_p, fout), lambda i: (0, 0)),
            pl.BlockSpec((1, fout), lambda i: (0, 0)),
        ],
        out_specs=pl.BlockSpec((tn, fout), lambda i: (i, 0)),
        compiler_params=pltpu.CompilerParams(
            dimension_semantics=("parallel",),
            vmem_limit_bytes=vmem_limit),
        cost_estimate=cost,
    )(x2, w1p, b1p, w2p, b2p)

    return out.reshape(*lead, fout)


def reference_forward(x, params, compute_dtype=jnp.float32):
    """Pure-JAX reference of Fw.forward (dtype-matched to the kernel path)."""
    w1 = params["w1"].astype(compute_dtype)
    w2 = params["w2"].astype(compute_dtype)
    b1 = params["b1"].reshape(1, -1).astype(jnp.float32)
    b2 = params["b2"].reshape(1, -1).astype(jnp.float32)
    xd = x.astype(compute_dtype)
    h = jnp.maximum(
        jnp.dot(xd, w1, preferred_element_type=jnp.float32) + b1, 0.0)
    return jnp.dot(h.astype(compute_dtype), w2,
                   preferred_element_type=jnp.float32) + b2


def init_params(key, fin_dim, fout_dim, fmid_dim=None):
    if not fmid_dim:
        fmid_dim = fout_dim
    k1, k2, k3, k4 = jax.random.split(key, 4)
    # Weights stored pre-transposed to (in, out): W1 = torch_linear1.weight.T.
    w1 = jax.random.normal(k1, (fin_dim, fmid_dim), jnp.float32) * 0.1
    b1 = jax.random.normal(k2, (1, fmid_dim), jnp.float32) * 0.1
    w2 = jax.random.normal(k3, (fmid_dim, fout_dim), jnp.float32) * 0.1
    b2 = jax.random.normal(k4, (1, fout_dim), jnp.float32) * 0.1
    return {"w1": w1, "b1": b1, "w2": w2, "b2": b2}


if __name__ == "__main__":
    fin_dim, fmid_dim, fout_dim = 32, 64, 16
    batch, seq = 2, 8                      # x: (2, 8, 32) -> 16 rows of width 32

    key = jax.random.PRNGKey(0)
    kp, kx = jax.random.split(key, 2)
    params = init_params(kp, fin_dim, fout_dim, fmid_dim)
    x = jax.random.normal(kx, (batch, seq, fin_dim), jnp.float32)

    # 1) f32 path: exact parity with the PyTorch module.
    y32 = jax.block_until_ready(fw_forward(x, params))
    assert y32.shape == (batch, seq, fout_dim)
    assert y32.dtype == jnp.float32
    np.testing.assert_allclose(
        np.asarray(y32), np.asarray(reference_forward(x, params)),
        rtol=1e-4, atol=1e-4)

    # 2) bf16 streaming path (f32 accumulation via preferred_element_type).
    xb = x.astype(jnp.bfloat16)
    yb = jax.block_until_ready(fw_forward(xb, params))
    assert yb.shape == (batch, seq, fout_dim)
    ref_b = reference_forward(xb, params, compute_dtype=jnp.bfloat16)
    np.testing.assert_allclose(
        np.asarray(yb.astype(jnp.float32)), np.asarray(ref_b),
        rtol=5e-2, atol=5e-2)

    print("KERNEL_OK")
</pallas_src>

<mosaic_0001>
module attributes {stable_mosaic.version = 11 : i64} {
  func.func @fw_kernel(%arg0: i32, %arg1: memref<16x32xf32, #tpu.memory_space<vmem>>, %arg2: memref<32x128xf32, #tpu.memory_space<vmem>>, %arg3: memref<1x128xf32, #tpu.memory_space<vmem>>, %arg4: memref<128x16xf32, #tpu.memory_space<vmem>>, %arg5: memref<1x16xf32, #tpu.memory_space<vmem>>, %arg6: memref<16x16xf32, #tpu.memory_space<vmem>>) attributes {dimension_semantics = [#tpu.dimension_semantics<parallel>], iteration_bounds = array<i64: 1>, scalar_prefetch = 0 : i64, scratch_operands = 0 : i64, tpu.core_type = #tpu.core_type<tc>, window_params = [{transform_indices = @transform_0, window_bounds = array<i64: 16, 32>}, {pipeline_mode = #tpu.pipeline_mode<synchronous>, transform_indices = @transform_1, window_bounds = array<i64: 32, 128>}, {pipeline_mode = #tpu.pipeline_mode<synchronous>, transform_indices = @transform_2, window_bounds = array<i64: 1, 128>}, {pipeline_mode = #tpu.pipeline_mode<synchronous>, transform_indices = @transform_3, window_bounds = array<i64: 128, 16>}, {pipeline_mode = #tpu.pipeline_mode<synchronous>, transform_indices = @transform_4, window_bounds = array<i64: 1, 16>}, {transform_indices = @transform_5, window_bounds = array<i64: 16, 16>}]} {
    %c0 = arith.constant 0 : index
    %c0_0 = arith.constant 0 : index
    %0 = vector.load %arg1[%c0, %c0_0] : memref<16x32xf32, #tpu.memory_space<vmem>>, vector<16x32xf32>
    %c0_1 = arith.constant 0 : index
    %c0_2 = arith.constant 0 : index
    %1 = vector.load %arg2[%c0_1, %c0_2] : memref<32x128xf32, #tpu.memory_space<vmem>>, vector<32x128xf32>
    %cst = arith.constant dense<0.000000e+00> : vector<16x128xf32>
    %2 = tpu.matmul %0, %1, %cst {dimension_numbers = #tpu.dot_dimension_numbers<[1], [0], [0], [1], [0, 0, 1, 1], [], []>} : vector<16x32xf32>, vector<32x128xf32>, vector<16x128xf32> -> vector<16x128xf32>
    %c0_3 = arith.constant 0 : index
    %c0_4 = arith.constant 0 : index
    %3 = vector.load %arg3[%c0_3, %c0_4] : memref<1x128xf32, #tpu.memory_space<vmem>>, vector<1x128xf32>
    %4 = vector.broadcast %3 : vector<1x128xf32> to vector<16x128xf32>
    %5 = arith.addf %2, %4 : vector<16x128xf32>
    %cst_5 = arith.constant 0.000000e+00 : f32
    %6 = vector.broadcast %cst_5 : f32 to vector<16x128xf32>
    %7 = arith.maximumf %5, %6 : vector<16x128xf32>
    %c0_6 = arith.constant 0 : index
    %c0_7 = arith.constant 0 : index
    %8 = vector.load %arg4[%c0_6, %c0_7] : memref<128x16xf32, #tpu.memory_space<vmem>>, vector<128x16xf32>
    %cst_8 = arith.constant dense<0.000000e+00> : vector<16x16xf32>
    %9 = tpu.matmul %7, %8, %cst_8 {dimension_numbers = #tpu.dot_dimension_numbers<[1], [0], [0], [1], [0, 0, 1, 1], [], []>} : vector<16x128xf32>, vector<128x16xf32>, vector<16x16xf32> -> vector<16x16xf32>
    %c0_9 = arith.constant 0 : index
    %c0_10 = arith.constant 0 : index
    %10 = vector.load %arg5[%c0_9, %c0_10] : memref<1x16xf32, #tpu.memory_space<vmem>>, vector<1x16xf32>
    %11 = vector.broadcast %10 : vector<1x16xf32> to vector<16x16xf32>
    %12 = arith.addf %9, %11 : vector<16x16xf32>
    %c0_11 = arith.constant 0 : index
    %c0_12 = arith.constant 0 : index
    %13 = vector.load %arg6[%c0_11, %c0_12] : memref<16x16xf32, #tpu.memory_space<vmem>>, vector<16x16xf32>
    tpu.vector_store %arg6[%c0_11, %c0_12], %12 {strides = array<i32>} : memref<16x16xf32, #tpu.memory_space<vmem>>, vector<16x16xf32>,
    return
  }
  func.func @transform_0(%arg0: i32) -> (i32, i32) {
    %c0_i32 = arith.constant 0 : i32
    %c0_i32_0 = arith.constant 0 : i32
    return %arg0, %c0_i32 : i32, i32
  }
  func.func @transform_1(%arg0: i32) -> (i32, i32) {
    %c0_i32 = arith.constant 0 : i32
    %c0_i32_0 = arith.constant 0 : i32
    %c0_i32_1 = arith.constant 0 : i32
    return %c0_i32, %c0_i32_0 : i32, i32
  }
  func.func @transform_2(%arg0: i32) -> (i32, i32) {
    %c0_i32 = arith.constant 0 : i32
    %c0_i32_0 = arith.constant 0 : i32
    %c0_i32_1 = arith.constant 0 : i32
    return %c0_i32, %c0_i32_0 : i32, i32
  }
  func.func @transform_3(%arg0: i32) -> (i32, i32) {
    %c0_i32 = arith.constant 0 : i32
    %c0_i32_0 = arith.constant 0 : i32
    %c0_i32_1 = arith.constant 0 : i32
    return %c0_i32, %c0_i32_0 : i32, i32
  }
  func.func @transform_4(%arg0: i32) -> (i32, i32) {
    %c0_i32 = arith.constant 0 : i32
    %c0_i32_0 = arith.constant 0 : i32
    %c0_i32_1 = arith.constant 0 : i32
    return %c0_i32, %c0_i32_0 : i32, i32
  }
  func.func @transform_5(%arg0: i32) -> (i32, i32) {
    %c0_i32 = arith.constant 0 : i32
    %c0_i32_0 = arith.constant 0 : i32
    return %arg0, %c0_i32 : i32, i32
  }
}

</mosaic_0001>

<bundles_post_ra>
// kernel: tpu_custom_call.1
= control target key start
LH: loop header
LB: loop body
LE: loop exit
PB: predicated region body
PF: predicated region fallthrough
CT: control target
= control target key end

     0   :  { %vm31_vm0 = vcmask 261120   ;;  %s286_s0 = inlined_call_operand.vmem [shape: f32[16,32], index: 0, kind: input, shape index: {}]   ;;  %s287_s1 = inlined_call_operand.vmem [shape: f32[32,128], index: 1, kind: input, shape index: {}]   ;;  %s288_s2 = inlined_call_operand.vmem [shape: f32[1,128], index: 2, kind: input, shape index: {}]   ;;  %s289_s3 = inlined_call_operand.vmem [shape: f32[128,16], index: 3, kind: input, shape index: {}]   ;;  %s290_s4 = inlined_call_operand.vmem [shape: f32[1,16], index: 4, kind: input, shape index: {}]   ;;  %s291_s5 = inlined_call_operand.hbm [shape: f32[16,16], index: 5, kind: output, shape index: {}]  }
   0x1   :  { %v26_v0 = vld [vmem:[%s287_s1 + $0x18] sm:$0xff]  ;;  %v25_v1 = vld [vmem:[%s287_s1 + $0x10] sm:$0xff]  ;;  %v24_v2 = vld [vmem:[%s287_s1 + $0x8] sm:$0xff] }
   0x2   :  { %50 = vmatpush.msra.mxu0 %v26_v0  ;;  %v78_v3 = vld [vmem:[%s289_s3 + $0x78] sm:$0xff]  ;;  %v77_v4 = vld [vmem:[%s289_s3 + $0x70] sm:$0xff]  ;;  %v23_v5 = vld [vmem:[%s287_s1] sm:$0xff] }
   0x3   :  { %83 = vmatpush.msra.mxu1 %v78_v3  ;;  %v76_v6 = vld [vmem:[%s289_s3 + $0x68] sm:$0xff]  ;;  %129 = vmatpush.msra.mxu2 %v78_v3  ;;  %v21_v7 = vld [vmem:[%s286_s0] sm:$0xff] }
   0x4   :  { %51 = vmatpush.msra.mxu0 %v25_v1  ;;  %v75_v8 = vld [vmem:[%s289_s3 + $0x60] sm:$0xff] }
   0x5   :  { %84 = vmatpush.msra.mxu1 %v77_v4  ;;  %130 = vmatpush.msra.mxu2 %v77_v4 }
   0x6   :  { %52 = vmatpush.msra.mxu0 %v24_v2 }
   0x7   :  { %85 = vmatpush.msra.mxu1 %v76_v6 }
   0x8   :  { %53 = vmatpush.msra.mxu0 %v23_v5 }
   0x9   :  { %10 = vsyncpa [#allocation3], 0  ;;  %127 = vmatmul.msk.f32.vlgmr.msra.gmra.mxu0 %vm31_vm0, %v21_v7  ;;  %v74_v9 = vld [vmem:[%s289_s3 + $0x58] sm:$0xff]  ;;  %131 = vmatpush.msra.mxu2 %v76_v6  ;;  %v73_v10 = vld [vmem:[%s289_s3 + $0x50] sm:$0xff]  ;;  %vm106_vm1 = vcmask 130048   ;;  %s115_s15 = sshll.u32 %s291_s5, 4  ;;  %s116_s15 = int_to_ptr.hbm [resolvable:$true] %s115_s15 }
   0xa   :  { %86 = vmatpush.msra.mxu1 %v75_v8  ;;  %v72_v11 = vld [vmem:[%s289_s3 + $0x48] sm:$0xff]  ;;  %v71_v13 = vld [vmem:[%s289_s3 + $0x40] sm:$0xff]  ;;  %v70_v14 = vld [vmem:[%s289_s3 + $0x38] sm:$0xff]  ;;  %s177_s16 = smov 128   ;;  %s178_s17 = smov 8  }
   0xb   :  { %132 = vmatpush.msra.mxu2 %v75_v8  ;;  %v22_v12 = vld [vmem:[%s286_s0 + $0x8] sm:$0xff]  ;;  %v69_v15 = vld [vmem:[%s289_s3 + $0x30] sm:$0xff]  ;;  %v67_v17 = vld [vmem:[%s289_s3 + $0x20] sm:$0xff] }
   0xc   :  { %87 = vmatpush.msra.mxu1 %v74_v9  ;;  %v68_v16 = vld [vmem:[%s289_s3 + $0x28] sm:$0xff]  ;;  %v66_v18 = vld [vmem:[%s289_s3 + $0x18] sm:$0xff]  ;;  %v65_v19 = vld [vmem:[%s289_s3 + $0x10] sm:$0xff] }
   0xd   :  { %133 = vmatpush.msra.mxu2 %v74_v9  ;;  %v64_v20 = vld [vmem:[%s289_s3 + $0x8] sm:$0xff]  ;;  %v63_v21 = vld [vmem:[%s289_s3] sm:$0xff]  ;;  %s176_s3 = smov [#allocation2]  }
   0xe   :  { %88 = vmatpush.msra.mxu1 %v73_v10  ;;  %v148_v22 = vld [vmem:[%s288_s2] ss:$0 sm:$0xff]  ;;  %s113_s13 = sshll.u32 %s176_s3, 4  ;;  %s114_s13 = int_to_ptr.vmem [resolvable:$true] %s113_s13 }
   0xf   :  { %134 = vmatpush.msra.mxu2 %v73_v10  ;;  %v149_v29 = vld [vmem:[%s290_s4] ss:$0 sm:$0xff] }
  0x10   :  { %89 = vmatpush.msra.mxu1 %v72_v11 }
  0x11   :  { %128 = vmatmul.msk.f32.gmra.mxu0 %vm31_vm0, %v22_v12  ;;  %135 = vmatpush.msra.mxu2 %v72_v11 }
  0x12   :  { %90 = vmatpush.msra.mxu1 %v71_v13 }
  0x13   :  { %136 = vmatpush.msra.mxu2 %v71_v13 }
  0x14   :  { %91 = vmatpush.msra.mxu1 %v70_v14 }
  0x15   :  { %137 = vmatpush.msra.mxu2 %v70_v14 }
  0x16   :  { %92 = vmatpush.msra.mxu1 %v69_v15 }
  0x17   :  { %138 = vmatpush.msra.mxu2 %v69_v15 }
  0x18   :  { %93 = vmatpush.msra.mxu1 %v68_v16 }
  0x19   :  { %139 = vmatpush.msra.mxu2 %v68_v16 }
  0x1a   :  { %94 = vmatpush.msra.mxu1 %v67_v17 }
  0x1b   :  { %140 = vmatpush.msra.mxu2 %v67_v17 }
  0x1c   :  { %95 = vmatpush.msra.mxu1 %v66_v18 }
  0x1d   :  { %141 = vmatpush.msra.mxu2 %v66_v18 }
  0x1e   :  { %96 = vmatpush.msra.mxu1 %v65_v19 }
  0x1f   :  { %142 = vmatpush.msra.mxu2 %v65_v19 }
  0x20   :  { %97 = vmatpush.msra.mxu1 %v64_v20 }
  0x21   :  { %143 = vmatpush.msra.mxu2 %v64_v20 }
  0x22   :  { %98 = vmatpush.msra.mxu1 %v63_v21 }
  0x23   :  { %144 = vmatpush.msra.mxu2 %v63_v21 }
  0x86   :  { %v55_v23 = vpop.f32.mrf.mxu0 }
  0x87   :  { %v56_v24 = vadd.f32 %v148_v22, %v55_v23 }
  0x89   :  { %v61_v25 = vmax.f32 %v56_v24, 0.0 }
  0x8b   :  { %99 = vmatmul.f32.vlgmr.msra.gmra.mxu1 %v61_v25 }
  0x8e   :  { %v58_v26 = vpop.f32.mrf.mxu0 }
  0x8f   :  { %v59_v27 = vadd.f32 %v148_v22, %v58_v26 }
  0x91   :  { %v62_v28 = vmax.f32 %v59_v27, 0.0 }
  0x93   :  { %102 = vmatmul.f32.vlgmr.msra.gmra.mxu2 %v62_v28 }
 0x108   :  { %v100_v30 = vpop.f32.mrf.mxu1 }
 0x109   :  { %v101_v31 = vadd.f32 %v149_v29, %v100_v30 }
 0x10b   :  { %107 = vst.msk [vmem:[#allocation2] sm:$0xff] %vm106_vm1, %v101_v31 }
 0x116   :  { %v103_v32 = vpop.f32.mrf.mxu2 }
 0x117   :  { %v104_v33 = vadd.f32 %v149_v29, %v103_v32 }
 0x119   :  { %108 = vst.msk [vmem:[#allocation2 + $0x8] sm:$0xff] %vm106_vm1, %v104_v33 }
 0x11a   :  { %121 = dma.vmem_to_hbm [thread:$0]  %s114_s13, 256, %s116_s15, [#allocation3], %s177_s16, %s177_s16, %s178_s17  }
 0x11b   :  { %174 = dma.done.wait [#allocation3], 256  }
 0x11c   :  { %175 = vsyncadd [#allocation3], 4294967040 }
 0x11d   :  { %126 = vsyncpa [#allocation3], 1 }

</bundles_post_ra>
